<compile_context>
chip_gen: v5e
topology: v5e:2x2
jax: 0.10.0
libtpu: 0.0.40
codegen_flags: <defaults>
</compile_context>

<pallas_src>
import functools
import math

import numpy as np

import jax
import jax.numpy as jnp
from jax.experimental import pallas as pl
from jax.experimental.pallas import tpu as pltpu


def _log_sigmoid(v):
    # matches F.logsigmoid: min(x, 0) - log1p(exp(-|x|))
    return jnp.minimum(v, 0.0) - jnp.log1p(jnp.exp(-jnp.abs(v)))


def _qrnn_kernel(lmask_ref, umask_ref, xcol_ref, w_ref, b_ref, out_ref, *,
                 t_pad: int, b_blk: int, ht: int):
    # lmask_ref : (R, R)  f32 inclusive-prefix block-diagonal mask (resident, fetched once)
    # umask_ref : (R, R)  f32 strict-suffix block-diagonal mask (resident, fetched once)
    # xcol_ref  : (R, K*C_in)   bf16 im2col'd inputs, R = b_blk * t_pad rows (batch-major)
    # w_ref     : (K*C_in, 2*ht) bf16 fused [z | f] conv weights for this hidden tile
    # b_ref     : (1, 2*ht)      f32 fused [z | f] bias for this hidden tile
    # out_ref   : (R, ht)        f32 hidden states

    # Causal Conv1d for BOTH gates on this hidden tile == one MXU matmul (bf16 in,
    # f32 accumulate) over the im2col'd inputs.
    raw = jnp.dot(xcol_ref[...], w_ref[...], preferred_element_type=jnp.float32)
    raw = raw + b_ref[...]
    raw_z = raw[:, :ht]
    raw_f = raw[:, ht:]

    log_z = _log_sigmoid(raw_z)
    log_f = _log_sigmoid(raw_f)
    log_one_minus_f = log_f - raw_f        # logsigmoid(-x) == logsigmoid(x) - x (exact)

    # recurrent_gates[t] = sum_{s>t} log_f[s]  (strict suffix sum, per batch element)
    rg = jnp.dot(umask_ref[...], log_f, preferred_element_type=jnp.float32)
    a = log_z + log_one_minus_f + rg

    # Per-batch-element stabilizer; it cancels algebraically so any per-element
    # constant is valid, and a per-element (not block-wide) max avoids cross-batch
    # underflow. b_blk is a small static int -> trace-time unrolled.
    if b_blk == 1:
        m = jnp.max(a, axis=0, keepdims=True)
    else:
        segs = []
        for g in range(b_blk):
            seg_max = jnp.max(a[g * t_pad:(g + 1) * t_pad, :], axis=0, keepdims=True)
            segs.append(jnp.broadcast_to(seg_max, (t_pad, ht)))
        m = jnp.concatenate(segs, axis=0)

    e = jnp.exp(a - m)
    c = jnp.dot(lmask_ref[...], e, preferred_element_type=jnp.float32)  # cumsum of exp
    # hidden = exp(logcumsumexp(a) - rg) = exp(m + log(c) - rg)   (reference-stable form)
    out_ref[...] = jnp.exp((m - rg) + jnp.log(c)).astype(out_ref.dtype)


def _choose_b_blk(B: int, Tp: int) -> int:
    """How many whole batch elements to pack into one grid step.

    Packing fills the MXU M dimension when a single element is short, but the
    block-diagonal masked matmuls waste a factor of B_blk MXU FLOPs, so never pack
    once a single element already spans >= 128 rows. Blocks always align to
    batch-element boundaries (and to 8 sublanes since Tp % 8 == 0), R is capped at
    512, and >= 2 grid steps are preferred so v7x's second TensorCore is not idle.
    """
    if Tp >= 128:
        return 1
    divisors = [d for d in range(1, B + 1) if B % d == 0]
    cands = [d for d in divisors if d * Tp <= 512]
    if not cands:
        return 1
    multi = [d for d in cands if B // d >= 2]          # keep >= 2 grid steps if possible
    pool = multi if multi else cands
    full = [d for d in pool if d * Tp >= 128]          # smallest tile that fills M >= 128
    return min(full) if full else max(pool)


def qrnn_forward(inputs, init_state, wz, bz, wf, bf, kernel_size, *,
                 conv_dtype=jnp.bfloat16):
    """QRNNLayer.forward (mode='f', zoneout=0.0).

    inputs: [B, T, C_in] f32; wz/wf: torch Conv1d weights [H, C_in, K]; bz/bf: [H].
    init_state is accepted but unused (the torch forward never reads it in mode 'f').
    """
    del init_state
    B, T, C_in = inputs.shape
    H = wz.shape[0]
    K = kernel_size
    LANE = 128

    Hp = -(-H // LANE) * LANE                 # lane-dense hidden width
    # Hidden tile for the recurrence matmuls: 256 matches v6e/v7x's 256-wide MXU,
    # 128 is the natural width on v5e; use 256 only when it divides Hp.
    HT = 256 if (Hp % 256 == 0) else 128
    nH = Hp // HT

    Tp = -(-T // 8) * 8                        # sublane-align each element's time extent
    B_blk = _choose_b_blk(B, Tp)
    nB = B // B_blk
    R = B_blk * Tp
    KC = K * C_in

    # im2col of the causally left-padded input: xcol[b, t, k*C_in + c] = x_pad[b, t+k, c]
    xp = jnp.pad(inputs.astype(jnp.float32), ((0, 0), (K - 1, 0), (0, 0)))
    xcol = jnp.concatenate([xp[:, k:k + T, :] for k in range(K)], axis=-1)   # (B, T, KC)
    xcol = jnp.pad(xcol, ((0, 0), (0, Tp - T), (0, 0)))                      # time padding
    xcol = xcol.reshape(B * Tp, KC).astype(conv_dtype)

    def prep_w(w):  # torch Conv1d weight [H, C_in, K] -> [K*C_in, Hp]
        wk = jnp.transpose(w, (2, 1, 0)).reshape(KC, H).astype(jnp.float32)
        return jnp.pad(wk, ((0, 0), (0, Hp - H)))

    wz_p, wf_p = prep_w(wz), prep_w(wf)
    bz_p = jnp.pad(bz.astype(jnp.float32), (0, Hp - H))
    bf_p = jnp.pad(bf.astype(jnp.float32), (0, Hp - H))
    # Interleave per hidden tile: [z_0 | f_0 | z_1 | f_1 | ...] so one fused matmul per
    # grid step covers both gates of the current tile.
    w_tiles, b_tiles = [], []
    for j in range(nH):
        sl = slice(j * HT, (j + 1) * HT)
        w_tiles += [wz_p[:, sl], wf_p[:, sl]]
        b_tiles += [bz_p[sl], bf_p[sl]]
    w_zf = jnp.concatenate(w_tiles, axis=1).astype(conv_dtype)   # (KC, 2*Hp)
    b_zf = jnp.concatenate(b_tiles).reshape(1, 2 * Hp)           # f32

    # Block-diagonal causal masks, built ONCE on the host (constant index_map keeps
    # them resident in VMEM — no per-step iota/divide work, no (T,T) per-step DMA).
    pos = np.arange(R)
    grp, tt = pos // Tp, pos % Tp
    same = grp[:, None] == grp[None, :]
    vald = tt < T
    vmat = vald[:, None] & vald[None, :]
    lmask = jnp.asarray(same & (tt[None, :] <= tt[:, None]) & vmat, jnp.float32)
    umask = jnp.asarray(same & (tt[None, :] > tt[:, None]) & vmat, jnp.float32)

    grid = (nB, nH)
    kern = functools.partial(_qrnn_kernel, t_pad=Tp, b_blk=B_blk, ht=HT)

    itemsize = lambda x: int(x.size) * int(x.dtype.itemsize)
    flops = nB * nH * (2 * R * KC * (2 * HT) + 2 * 2 * R * R * HT)
    bytes_accessed = (itemsize(lmask) + itemsize(umask) + itemsize(xcol)
                      + itemsize(w_zf) + itemsize(b_zf) + B * Tp * Hp * 4)

    out_flat = pl.pallas_call(
        kern,
        out_shape=jax.ShapeDtypeStruct((B * Tp, Hp), jnp.float32),
        grid=grid,
        in_specs=[
            pl.BlockSpec((R, R), lambda i, j: (0, 0)),         # lmask (resident)
            pl.BlockSpec((R, R), lambda i, j: (0, 0)),         # umask (resident)
            pl.BlockSpec((R, KC), lambda i, j: (i, 0)),        # im2col'd inputs
            pl.BlockSpec((KC, 2 * HT), lambda i, j: (0, j)),   # fused [z|f] weights
            pl.BlockSpec((1, 2 * HT), lambda i, j: (0, j)),    # fused [z|f] bias
        ],
        out_specs=pl.BlockSpec((R, HT), lambda i, j: (i, j)),
        compiler_params=pltpu.CompilerParams(
            dimension_semantics=("parallel", "parallel")),
        cost_estimate=pl.CostEstimate(
            flops=flops,
            transcendentals=6 * nB * nH * R * HT,
            bytes_accessed=bytes_accessed),
    )(lmask, umask, xcol, w_zf, b_zf)

    return out_flat.reshape(B, Tp, Hp)[:, :T, :H]


def qrnn_reference(inputs, wz, bz, wf, bf, K):
    """Pure-JAX port of the torch forward (mode='f', zoneout=0), all f32."""
    B, T, _ = inputs.shape
    H = wz.shape[0]
    xp = jnp.pad(inputs, ((0, 0), (K - 1, 0), (0, 0)))

    def conv(w, b):
        acc = jnp.zeros((B, T, H), jnp.float32)
        for k in range(K):
            acc = acc + jnp.einsum("btc,hc->bth", xp[:, k:k + T, :], w[:, :, k])
        return acc + b[None, None, :]

    raw_z = conv(wz, bz)
    raw_f = conv(wf, bf)
    log_z = _log_sigmoid(raw_z)
    log_f = _log_sigmoid(raw_f)
    log_1mf = _log_sigmoid(-raw_f)

    rg = log_f[:, 1:, :]
    cs = jnp.cumsum(rg, axis=1)
    rg = rg - cs + cs[:, -1:, :]
    rg = jnp.concatenate([rg, jnp.zeros((B, 1, H), jnp.float32)], axis=1)

    a = log_z + log_1mf + rg
    m = jnp.max(a, axis=1, keepdims=True)
    lh = m + jnp.log(jnp.cumsum(jnp.exp(a - m), axis=1))
    return jnp.exp(lh - rg)


def _make_params(key, C_in, H, K):
    k_wz, k_bz, k_wf, k_bf = jax.random.split(key, 4)
    # Deterministic PyTorch-style Conv1d init: U(-1/sqrt(C_in*K), +1/sqrt(C_in*K))
    bound = 1.0 / math.sqrt(C_in * K)
    wz = jax.random.uniform(k_wz, (H, C_in, K), minval=-bound, maxval=bound, dtype=jnp.float32)
    bz = jax.random.uniform(k_bz, (H,), minval=-bound, maxval=bound, dtype=jnp.float32)
    wf = jax.random.uniform(k_wf, (H, C_in, K), minval=-bound, maxval=bound, dtype=jnp.float32)
    bf = jax.random.uniform(k_bf, (H,), minval=-bound, maxval=bound, dtype=jnp.float32)
    return wz, bz, wf, bf


def _check(key, B, T, C_in, H, K):
    k_in, k_par = jax.random.split(key)
    wz, bz, wf, bf = _make_params(k_par, C_in, H, K)
    inputs = jax.random.normal(k_in, (B, T, C_in), dtype=jnp.float32)
    init_state = jnp.zeros((B, H), dtype=jnp.float32)   # unused (mirrors torch forward)

    ref = qrnn_reference(inputs, wz, bz, wf, bf, K)

    # Default path: bf16 conv operands, f32 accumulation / recurrence.
    out = jax.block_until_ready(qrnn_forward(inputs, init_state, wz, bz, wf, bf, K))
    assert out.shape == (B, T, H)
    err = float(jnp.max(jnp.abs(out - ref)))
    assert jnp.allclose(out, ref, rtol=2e-2, atol=2e-2), err

    # Full f32 path: tight match against the reference.
    out32 = jax.block_until_ready(
        qrnn_forward(inputs, init_state, wz, bz, wf, bf, K, conv_dtype=jnp.float32))
    err32 = float(jnp.max(jnp.abs(out32 - ref)))
    assert jnp.allclose(out32, ref, rtol=2e-3, atol=2e-3), err32


if __name__ == "__main__":
    key = jax.random.PRNGKey(0)
    k1, k2 = jax.random.split(key)
    # Module-default small shapes (B=2, T=8, C_in=4, H=32, K=3): B_blk=1, grid=(2,1).
    _check(k1, B=2, T=8, C_in=4, H=32, K=3)
    # Exercises batch packing (B_blk=2) and time padding (T=12 -> Tp=16).
    _check(k2, B=4, T=12, C_in=4, H=32, K=3)
    print("KERNEL_OK")
</pallas_src>

<mosaic_0001>
module attributes {stable_mosaic.version = 11 : i64} {
  func.func @_qrnn_kernel(%arg0: i32, %arg1: i32, %arg2: memref<8x8xf32, #tpu.memory_space<vmem>>, %arg3: memref<8x8xf32, #tpu.memory_space<vmem>>, %arg4: memref<8x12xbf16, #tpu.memory_space<vmem>>, %arg5: memref<12x256xbf16, #tpu.memory_space<vmem>>, %arg6: memref<1x256xf32, #tpu.memory_space<vmem>>, %arg7: memref<8x128xf32, #tpu.memory_space<vmem>>) attributes {dimension_semantics = [#tpu.dimension_semantics<parallel>, #tpu.dimension_semantics<parallel>], iteration_bounds = array<i64: 2, 1>, scalar_prefetch = 0 : i64, scratch_operands = 0 : i64, tpu.core_type = #tpu.core_type<tc>, window_params = [{pipeline_mode = #tpu.pipeline_mode<synchronous>, transform_indices = @transform_0, window_bounds = array<i64: 8, 8>}, {pipeline_mode = #tpu.pipeline_mode<synchronous>, transform_indices = @transform_1, window_bounds = array<i64: 8, 8>}, {transform_indices = @transform_2, window_bounds = array<i64: 8, 12>}, {transform_indices = @transform_3, window_bounds = array<i64: 12, 256>}, {transform_indices = @transform_4, window_bounds = array<i64: 1, 256>}, {transform_indices = @transform_5, window_bounds = array<i64: 8, 128>}]} {
    %c0 = arith.constant 0 : index
    %c0_0 = arith.constant 0 : index
    %0 = vector.load %arg4[%c0, %c0_0] : memref<8x12xbf16, #tpu.memory_space<vmem>>, vector<8x12xbf16>
    %c0_1 = arith.constant 0 : index
    %c0_2 = arith.constant 0 : index
    %1 = vector.load %arg5[%c0_1, %c0_2] : memref<12x256xbf16, #tpu.memory_space<vmem>>, vector<12x256xbf16>
    %cst = arith.constant dense<0.000000e+00> : vector<8x256xf32>
    %2 = tpu.matmul %0, %1, %cst {dimension_numbers = #tpu.dot_dimension_numbers<[1], [0], [0], [1], [0, 0, 1, 1], [], []>} : vector<8x12xbf16>, vector<12x256xbf16>, vector<8x256xf32> -> vector<8x256xf32>
    %c0_3 = arith.constant 0 : index
    %c0_4 = arith.constant 0 : index
    %3 = vector.load %arg6[%c0_3, %c0_4] : memref<1x256xf32, #tpu.memory_space<vmem>>, vector<1x256xf32>
    %4 = vector.broadcast %3 : vector<1x256xf32> to vector<8x256xf32>
    %5 = arith.addf %2, %4 : vector<8x256xf32>
    %6 = vector.extract_strided_slice %5 {offsets = [0, 0], sizes = [8, 128], strides = [1, 1]} : vector<8x256xf32> to vector<8x128xf32>
    %7 = vector.extract_strided_slice %5 {offsets = [0, 128], sizes = [8, 128], strides = [1, 1]} : vector<8x256xf32> to vector<8x128xf32>
    %cst_5 = arith.constant 0.000000e+00 : f32
    %8 = vector.broadcast %cst_5 : f32 to vector<8x128xf32>
    %9 = arith.minimumf %6, %8 : vector<8x128xf32>
    %10 = math.absf %6 : vector<8x128xf32>
    %cst_6 = arith.constant 0.000000e+00 : f32
    %11 = vector.broadcast %cst_6 : f32 to vector<8x128xf32>
    %12 = arith.subf %11, %10 : vector<8x128xf32>
    %13 = math.exp %12 : vector<8x128xf32>
    %14 = math.log1p %13 : vector<8x128xf32>
    %15 = arith.subf %9, %14 : vector<8x128xf32>
    %cst_7 = arith.constant 0.000000e+00 : f32
    %16 = vector.broadcast %cst_7 : f32 to vector<8x128xf32>
    %17 = arith.minimumf %7, %16 : vector<8x128xf32>
    %18 = math.absf %7 : vector<8x128xf32>
    %cst_8 = arith.constant 0.000000e+00 : f32
    %19 = vector.broadcast %cst_8 : f32 to vector<8x128xf32>
    %20 = arith.subf %19, %18 : vector<8x128xf32>
    %21 = math.exp %20 : vector<8x128xf32>
    %22 = math.log1p %21 : vector<8x128xf32>
    %23 = arith.subf %17, %22 : vector<8x128xf32>
    %24 = arith.subf %23, %7 : vector<8x128xf32>
    %c0_9 = arith.constant 0 : index
    %c0_10 = arith.constant 0 : index
    %25 = vector.load %arg3[%c0_9, %c0_10] : memref<8x8xf32, #tpu.memory_space<vmem>>, vector<8x8xf32>
    %cst_11 = arith.constant dense<0.000000e+00> : vector<8x128xf32>
    %26 = tpu.matmul %25, %23, %cst_11 {dimension_numbers = #tpu.dot_dimension_numbers<[1], [0], [0], [1], [0, 0, 1, 1], [], []>} : vector<8x8xf32>, vector<8x128xf32>, vector<8x128xf32> -> vector<8x128xf32>
    %27 = arith.addf %15, %24 : vector<8x128xf32>
    %28 = arith.addf %27, %26 : vector<8x128xf32>
    %cst_12 = arith.constant dense<0xFF800000> : vector<128xf32>
    %29 = vector.multi_reduction <maximumf>, %28, %cst_12 [0] : vector<8x128xf32> to vector<128xf32>
    %30 = vector.shape_cast %29 : vector<128xf32> to vector<1x128xf32>
    %31 = vector.broadcast %30 : vector<1x128xf32> to vector<8x128xf32>
    %32 = arith.subf %28, %31 : vector<8x128xf32>
    %33 = math.exp %32 : vector<8x128xf32>
    %c0_13 = arith.constant 0 : index
    %c0_14 = arith.constant 0 : index
    %34 = vector.load %arg2[%c0_13, %c0_14] : memref<8x8xf32, #tpu.memory_space<vmem>>, vector<8x8xf32>
    %cst_15 = arith.constant dense<0.000000e+00> : vector<8x128xf32>
    %35 = tpu.matmul %34, %33, %cst_15 {dimension_numbers = #tpu.dot_dimension_numbers<[1], [0], [0], [1], [0, 0, 1, 1], [], []>} : vector<8x8xf32>, vector<8x128xf32>, vector<8x128xf32> -> vector<8x128xf32>
    %36 = vector.broadcast %30 : vector<1x128xf32> to vector<8x128xf32>
    %37 = arith.subf %36, %26 : vector<8x128xf32>
    %38 = math.log %35 : vector<8x128xf32>
    %39 = arith.addf %37, %38 : vector<8x128xf32>
    %40 = math.exp %39 : vector<8x128xf32>
    %c0_16 = arith.constant 0 : index
    %c0_17 = arith.constant 0 : index
    %41 = vector.load %arg7[%c0_16, %c0_17] : memref<8x128xf32, #tpu.memory_space<vmem>>, vector<8x128xf32>
    tpu.vector_store %arg7[%c0_16, %c0_17], %40 {strides = array<i32>} : memref<8x128xf32, #tpu.memory_space<vmem>>, vector<8x128xf32>,
    return
  }
  func.func @transform_0(%arg0: i32, %arg1: i32) -> (i32, i32) {
    %c0_i32 = arith.constant 0 : i32
    %c0_i32_0 = arith.constant 0 : i32
    %c0_i32_1 = arith.constant 0 : i32
    return %c0_i32, %c0_i32_0 : i32, i32
  }
  func.func @transform_1(%arg0: i32, %arg1: i32) -> (i32, i32) {
    %c0_i32 = arith.constant 0 : i32
    %c0_i32_0 = arith.constant 0 : i32
    %c0_i32_1 = arith.constant 0 : i32
    return %c0_i32, %c0_i32_0 : i32, i32
  }
  func.func @transform_2(%arg0: i32, %arg1: i32) -> (i32, i32) {
    %c0_i32 = arith.constant 0 : i32
    %c0_i32_0 = arith.constant 0 : i32
    return %arg0, %c0_i32 : i32, i32
  }
  func.func @transform_3(%arg0: i32, %arg1: i32) -> (i32, i32) {
    %c0_i32 = arith.constant 0 : i32
    %c0_i32_0 = arith.constant 0 : i32
    return %c0_i32, %arg1 : i32, i32
  }
  func.func @transform_4(%arg0: i32, %arg1: i32) -> (i32, i32) {
    %c0_i32 = arith.constant 0 : i32
    %c0_i32_0 = arith.constant 0 : i32
    return %c0_i32, %arg1 : i32, i32
  }
  func.func @transform_5(%arg0: i32, %arg1: i32) -> (i32, i32) {
    %c0_i32 = arith.constant 0 : i32
    return %arg0, %arg1 : i32, i32
  }
}

</mosaic_0001>

<bundles_post_ra>
// kernel: tpu_custom_call.1
= control target key start
LH: loop header
LB: loop body
LE: loop exit
PB: predicated region body
PF: predicated region fallthrough
CT: control target
= control target key end

     0   :  { %s1190_s0 = inlined_call_operand.hbm [shape: f32[8,8], index: 0, kind: input, shape index: {}]   ;;  %s1191_s1 = inlined_call_operand.hbm [shape: f32[8,8], index: 1, kind: input, shape index: {}]   ;;  %s1192_s2 = inlined_call_operand.hbm [shape: bf16[16,12], index: 2, kind: input, shape index: {}]   ;;  %s1193_s3 = inlined_call_operand.hbm [shape: bf16[12,256], index: 3, kind: input, shape index: {}]   ;;  %s1194_s4 = inlined_call_operand.vmem [shape: f32[1,256], index: 4, kind: input, shape index: {}]   ;;  %s1195_s5 = inlined_call_operand.hbm [shape: f32[16,128], index: 5, kind: output, shape index: {}]  }
   0x1   :  { %1196 = sst [smem:[#allocation15_spill]] %s1190_s0 }
   0x2   :  { %1197 = sst [smem:[#allocation16_spill]] %s1191_s1 }
   0x3   :  { %10 = vsyncpa [#allocation3], 0 }
   0x4   :  { %11 = vsyncpa [#allocation6], 0 }
   0x5   :  { %12 = vsyncpa [#allocation4], 0 }
   0x6   :  { %14 = vsyncpa [#allocation4 + $0x1], 0  ;;  %s1012_s18 = smov 0   ;;  %s1014_s19 = smov 0  }
   0x7   :  { %s1016_s20 = smov 0   ;;  %s1018_s21 = smov 0  }
   0x8   :  { %s1020_s22 = smov 0   ;;  %s1022_s23 = smov 0  }
   0x9 LB: > { %s1043_s24 = sadd.s32 4294967295, %s975_s23   ;;  %s619_s25 = sadd.s32 4294967294, %s975_s23   ;;  %s975_s23 = sphi %s1022_s23, %s20_s23   ;;  %s971_s22 = sphi %s1020_s22, %s1210_s22   ;;  %s967_s21 = sphi %s1018_s21, %s1209_s21   ;;  %s963_s20 = sphi %s1016_s20, %s1208_s20   ;;  %s959_s19 = sphi %s1014_s19, %s1207_s19   ;;  %s955_s18 = sphi %s1012_s18, %s1206_s18  }
   0xa   : > { %p94_p0 = scmp.ne.s32.totalorder %s959_s19, %s955_s18  ;;  %p95_p1 = scmp.eq.s32.totalorder %s1043_s24, 0 }
   0xb   : > { %p172_p2 = scmp.eq.s32.totalorder %s1043_s24, 1  ;;  %p178_p3 = scmp.eq.s32.totalorder %s619_s25, 1 }
   0xc   : > { %p1052_p4 = por %p95_p1, %p94_p0  ;;  %p620_p5 = scmp.ge.s32.totalorder %s975_s23, 1 }
   0xd   : > { %p1057_p6 = por %p178_p3, %p94_p0  ;;  %p185_p7 = scmp.lt.s32.totalorder %s975_s23, 3 }
   0xe   : > { %s1200_s0 = sld [smem:[#allocation15_spill]]  ;;  %p625_p9 = scmp.ge.s32.totalorder %s975_s23, 2 }
   0xf   : > { %p1065_p8 = pnand %p620_p5, %p185_p7  ;;  %s977_s7 = smov [#allocation2]  }
  0x10   : > { %s199_s8 = sshll.u32 %s977_s7, 4  ;;  %s1202_s1 = sld [smem:[#allocation16_spill]]  ;;  %s200_s8 = int_to_ptr.vmem [resolvable:$true] %s199_s8 }
  0x11   : > { %p668_p10 = pneg %p1065_p8  ;;  %s223_s15 = sshll.u32 %s1193_s3, 4  ;;  %s224_s15 = int_to_ptr.hbm [resolvable:$true] %s223_s15 }
  0x12   : > { %s978_s16 = smov [#allocation5]   ;;  %s979_s25 = smov [#allocation8]  }
  0x13   : > { %p1077_p11 = pnand %p668_p10, %p95_p1  ;;  %s211_s17 = sshll.u32 %s978_s16, 4  ;;  %s212_s17 = int_to_ptr.vmem [resolvable:$true] %s211_s17 }
  0x14   : > { %s197_s30 = sshll.u32 %s1200_s0, 4  ;;  %s225_s28 = sshll.u32 %s979_s25, 4  ;;  %s198_s30 = int_to_ptr.hbm [resolvable:$true] %s197_s30  ;;  %s226_s28 = int_to_ptr.vmem [resolvable:$true] %s225_s28 }
  0x15   : > { %671 = dma.hbm_to_vmem [thread:$0]  (!%p1077_p11), %s198_s30, 128, %s200_s8, [#allocation3]  }
  0x16   : > { %s209_s11 = sshll.u32 %s1202_s1, 4  ;;  %s980_s29 = smov 128   ;;  %s210_s11 = int_to_ptr.hbm [resolvable:$true] %s209_s11 }
  0x17   : > { %674 = dma.hbm_to_vmem [thread:$0]  (!%p1077_p11), %s210_s11, 128, %s212_s17, [#allocation6]  }
  0x18   : > { %s981_s7 = smov 8   ;;  %s32_s9 = sadd.s32 1, %s971_s22 }
  0x19   : > { %677 = dma.hbm_to_vmem [thread:$0]  (!%p1077_p11), %s224_s15, 256, %s226_s28, [#allocation6], %s980_s29, %s980_s29, %s981_s7  }
  0x1a   : > { %p88_p12 = scmp.ne.s32.totalorder %s963_s20, %s959_s19  ;;  %p34_p13 = scmp.ge.s32.totalorder %s32_s9, 2 }
  0x1b   : > { %p89_p0 = scmp.eq.s32.totalorder %s975_s23, 0  ;;  %s81_s30 = sadd.s32 1, %s963_s20 }
  0x1c   : > { %p1097_p3 = por %p172_p2, %p88_p12  ;;  %s1212_s9 = smov (%p34_p13, %s32_s9), 0 }
  0x1d   : > { %p1103_p5 = por %p89_p0, %p88_p12  ;;  %p689_p7 = scmp.lt.s32.totalorder %s975_s23, 2 }
  0x1e   : > { %s78_s11 = ssub.s32 %s971_s22, %s1212_s9  ;;  %s247_s12 = sand.u32 1, %s975_s23  }
  0x1f   : > { %p79_p10 = scmp.eq.s32.totalorder %s78_s11, 0  ;;  %s249_s13 = sand.u32 1, %s963_s20  }
  0x20   : > { %s626_s14 = sshll.u32 %s249_s13, 2  ;;  %s627_s15 = sshll.u32 %s971_s22, 2 }
  0x21   : > { %s1114_s16 = scalar_select %p79_p10, %s963_s20, %s81_s30  }
  0x22   : > { %s255_s28 = scalar_lea.hbm %s1192_s2, %s627_s15  ;;  %s251_s7 = scalar_lea.vmem [#allocation7], %s626_s14 }
  0x23   : > { %s257_s29 = sshll.u32 %s255_s28, 4  ;;  %s259_s0 = sshll.u32 %s251_s7, 4  ;;  %s258_s29 = int_to_ptr.hbm [resolvable:$true] %s257_s29  ;;  %s260_s0 = int_to_ptr.vmem [resolvable:$true] %s259_s0 }
  0x24   : > { %p679_p2 = pnand %p689_p7, %p1103_p5  ;;  %s248_s1 = scalar_lea.sflag [#allocation3], %s247_s12 }
  0x25   : > { %268 = sbr.rel (%p1065_p8) target bundleno = 528 (0x210), region = 40 }
  0x26   : > { %681 = dma.hbm_to_vmem [thread:$0]  (!%p679_p2), %s258_s29, 64, %s260_s0, %s248_s1  }
  0x2a   : > { %934 = dma.done.wait (%p95_p1), [#allocation3], 128  }
  0x2b   : > { %936 = vsyncadd (%p95_p1), [#allocation3], 4294967168 }
  0x2c   : > { %938 = dma.done.wait (%p95_p1), [#allocation6], 128  }
  0x2d   : > { %940 = vsyncadd (%p95_p1), [#allocation6], 4294967168  ;;  %s280_s30 = sand.u32 1, %s1043_s24   ;;  %s1135_s0 = sand.u32 1, %s959_s19  }
  0x2e   : > { %s631_s1 = sshll.u32 %s1135_s0, 2  ;;  %s281_s6 = scalar_lea.sflag [#allocation3], %s280_s30 }
  0x2f   : > { %s284_s10 = scalar_lea.vmem [#allocation7], %s631_s1 }
  0x30   : > { %942 = dma.done.wait (%p1052_p4), %s281_s6, 64  }
  0x31   : > { %944 = vsyncadd (%p1052_p4), %s281_s6, 4294967232 }
  0x32   : > { %946 = dma.done.wait (%p95_p1), [#allocation6], 256  }
  0x33   : > { %948 = vsyncadd (%p95_p1), [#allocation6], 4294967040  ;;  %vm349_vm0 = vcmask 1045504   ;;  %v650_v0 = vld [vmem:[#allocation8 + $0x4] sm:$0xf]  ;;  %vm345_vm1 = vcmask 97280  }
  0x34   : > { %v638_v1 = vld [vmem:[#allocation8 + $0x8] sm:$0x30]  ;;  %v636_v2 = vld [vmem:[#allocation8] sm:$0xf]  ;;  %v651_v4 = vld [vmem:[#allocation8 + $0x4] sm:$0x30] }
  0x35   : > { %v641_v3 = vor.u32 %v650_v0, %v638_v1  ;;  %v637_v5 = vor.u32 %v651_v4, %v636_v2  ;;  %v328_v8 = vld [vmem:[%s284_s10] sm:$0xf]  ;;  %v331_v9 = vld [vmem:[%s1194_s4] sm:$0x3]  ;;  %v413_v44 = vld [vmem:[#allocation5] sm:$0xff]  ;;  %vm414_vm4 = vcmask 64512  }
  0x36   : > { %v334_v10 = vperm.slane %v331_v9, 1  ;;  %v333_v11 = vperm.slane %v331_v9, 0  ;;  %v449_v60 = vld [vmem:[#allocation2] sm:$0xff]  ;;  %s633_s24 = sshll.u32 %s1135_s0, 3  ;;  %s647_s12 = sshll.u32 %s967_s21, 3 }
  0x37   : > { %v354_v6 = vsel %vm349_vm0, %v641_v3, 0  ;;  %v351_v7 = vsel %vm349_vm0, %v637_v5, 0  ;;  %s492_s15 = scalar_lea.hbm %s1195_s5, %s647_s12  ;;  %s320_s17 = scalar_lea.vmem [#allocation9], %s633_s24 }
  0x38   : > { %376 = vmatpush.bf16.msra.mxu1 %v354_v6  ;;  %363 = vmatpush.bf16.msra.mxu0 %v351_v7  ;;  %s494_s25 = sshll.u32 %s320_s17, 4  ;;  %s496_s28 = sshll.u32 %s492_s15, 4  ;;  %s495_s25 = int_to_ptr.vmem [resolvable:$true] %s494_s25  ;;  %s497_s28 = int_to_ptr.hbm [resolvable:$true] %s496_s28 }
  0x39   : > { %s481_s29 = scalar_lea.sflag [#allocation4], %s1135_s0  ;;  %s895_s7 = sshra.s32 %s497_s28, 4  ;;  %s896_s7 = int_to_ptr.hbm [resolvable:$true] %s895_s7 }
  0x3a   : > { %s897_s30 = scalar_lea.hbm %s896_s7, 8  ;;  %s901_s6 = scalar_lea.hbm %s1195_s5, 16 }
  0x3b   : > { %643 = vmatmul.msk.bf16.vlgmr.msra.gmra.mxu1 %vm345_vm1, %v328_v8  ;;  %642 = vmatmul.msk.bf16.vlgmr.msra.gmra.mxu0 %vm345_vm1, %v328_v8  ;;  %p898_p1 = scmp.ne.s32.totalorder %s896_s7, %s897_s30  ;;  %p902_p11 = scmp.lt.s32.totalorder %s896_s7, %s1195_s5 }
  0x3c   : > { %p903_p12 = scmp.lt.s32.totalorder %s901_s6, %s897_s30 }
  0x3d   : > { %p899_p4 = pnand %p898_p1, %p1097_p3 }
  0x3e   : > { %p904_p13 = por %p903_p12, %p902_p11 }
  0x3f   : > { %p900_p8 = pneg %p899_p4 }
  0x41   : > { %p905_p0 = pnand %p904_p13, %p900_p8 }
  0xb8   : > { %v378_v12 = vpop.f32.mrf.mxu1  ;;  %v365_v14 = vpop.f32.mrf.mxu0 }
  0xb9   : > { %v379_v13 = vadd.f32 %v378_v12, %v334_v10  ;;  %v366_v15 = vadd.f32 %v365_v14, %v333_v11 }
  0xbb   : > { %v398_v16 = vand.u32 2147483647, %v379_v13  ;;  %v383_v17 = vand.u32 2147483647, %v366_v15  ;;  %v382_v37 = vmin.f32 %v366_v15, 0.0  ;;  %v397_v40 = vmin.f32 %v379_v13, 0.0 }
  0xbd   : > { %v399_v18 = vsub.f32 0.0, %v398_v16  ;;  %v384_v19 = vsub.f32 0.0, %v383_v17 }
  0xbf   : > { %v400_v20 = vmul.f32 1.442695, %v399_v18  ;;  %v385_v21 = vmul.f32 1.442695, %v384_v19 }
  0xc0   : > { %v380_v22 = vpop.f32.mrf.mxu1  ;;  %v367_v23 = vpop.f32.mrf.mxu0 }
  0xc1   : > { %747 = vpow2.f32 %v400_v20 }
  0xc2   : > { %749 = vpow2.f32 %v385_v21 }
  0xc7   : > { %v748_v24 = vpop.eup %747 }
  0xc8   : > { %v750_v25 = vpop.eup %749  ;;  %v402_v26 = vadd.f32 1.0, %v748_v24  ;;  %v405_v27 = vmul.f32 -0.5, %v748_v24  ;;  %v408_v33 = vand.u32 2147483647, %v748_v24 }
  0xc9   : > { %v387_v28 = vadd.f32 1.0, %v750_v25  ;;  %v390_v29 = vmul.f32 -0.5, %v750_v25  ;;  %v393_v32 = vand.u32 2147483647, %v750_v25 }
  0xca   : > { %751 = vlog2.f32 %v402_v26  ;;  %v406_v31 = vadd.f32 1.0, %v405_v27  ;;  %vm409_vm3 = vcmp.lt.f32.partialorder %v408_v33, 0.0004427343 }
  0xcb   : > { %753 = vlog2.f32 %v387_v28  ;;  %v391_v30 = vadd.f32 1.0, %v390_v29  ;;  %vm394_vm2 = vcmp.lt.f32.partialorder %v393_v32, 0.0004427343 }
  0xcc   : > { %v407_v39 = vmul.f32 %v748_v24, %v406_v31 }
  0xcd   : > { %v392_v35 = vmul.f32 %v750_v25, %v391_v30 }
  0xd0   : > { %v752_v34 = vpop.eup %751 }
  0xd1   : > { %v754_v36 = vpop.eup %753  ;;  %v404_v38 = vmul.f32 0.6931472, %v752_v34 }
  0xd2   : > { %v389_v41 = vmul.f32 0.6931472, %v754_v36 }
  0xd3   : > { %v410_v42 = vsel %vm409_vm3, %v407_v39, %v404_v38 }
  0xd4   : > { %v411_v43 = vsub.f32 %v397_v40, %v410_v42  ;;  %v395_v45 = vsel %vm394_vm2, %v392_v35, %v389_v41 }
  0xd5   : > { %v396_v46 = vsub.f32 %v382_v37, %v395_v45 }
  0xd6   : > { %v412_v47 = vsub.f32 %v411_v43, %v379_v13  ;;  %433 = vmatpush.msra.mxu2 %v411_v43 }
  0xd7   : > { %644 = vmatmul.msk.f32.vlgmr.msra.gmra.mxu2 %vm414_vm4, %v413_v44 }
  0xd8   : > { %v438_v48 = vadd.f32 %v412_v47, %v396_v46 }
 0x15a   : > { %v435_v49 = vpop.f32.mrf.mxu2 }
 0x15b   : > { %v439_v50 = vadd.f32 %v438_v48, %v435_v49 }
 0x15d   : > { %v440_v51 = vrot.slane %v439_v50, 4 }
 0x15f   : > { %v441_v52 = vmax.f32 %v439_v50, %v440_v51 }
 0x161   : > { %v442_v53 = vrot.slane %v441_v52, 2 }
 0x163   : > { %v443_v54 = vmax.f32 %v441_v52, %v442_v53 }
 0x165   : > { %v444_v55 = vrot.slane %v443_v54, 1 }
 0x167   : > { %v445_v56 = vmax.f32 %v443_v54, %v444_v55 }
 0x169   : > { %v473_v57 = vsub.f32 %v445_v56, %v435_v49  ;;  %v446_v58 = vsub.f32 %v439_v50, %v445_v56 }
 0x16b   : > { %v447_v59 = vmul.f32 1.442695, %v446_v58 }
 0x16d   : > { %755 = vpow2.f32 %v447_v59 }
 0x173   : > { %v756_v61 = vpop.eup %755 }
 0x174   : > { %468 = vmatpush.msra.mxu3 %v756_v61 }
 0x175   : > { %645 = vmatmul.msk.f32.vlgmr.msra.gmra.mxu3 %vm414_vm4, %v449_v60 }
 0x1f8   : > { %v470_v62 = vpop.f32.mrf.mxu3 }
 0x1f9   : > { %757 = vlog2.f32 %v470_v62 }
 0x1ff   : > { %v758_v63 = vpop.eup %757 }
 0x200   : > { %v475_v0 = vmul.f32 0.6931472, %v758_v63 }
 0x202   : > { %v476_v1 = vadd.f32 %v475_v0, %v473_v57 }
 0x204   : > { %v477_v2 = vmul.f32 1.442695, %v476_v1 }
 0x206   : > { %759 = vpow2.f32 %v477_v2 }
 0x20c   : > { %v760_v3 = vpop.eup %759 }
 0x20d   : > { %479 = vst [vmem:[%s320_s17] sm:$0xff] %v760_v3 }
 0x20e   : > { %908 = shalt.err (!%p905_p0)
}
 0x20f   : > { %666 = dma.vmem_to_hbm [thread:$0]  (%p1097_p3), %s495_s25, 128, %s497_s28, %s481_s29  }
 0x210 PF: > { %s508_s0 = sand.u32 1, %s955_s18   ;;  %p683_p5 = pnand %p625_p9, %p1057_p6 }
 0x211   : > { %s509_s11 = scalar_lea.sflag [#allocation4], %s508_s0 }
 0x212   : > { %p684_p7 = pneg %p683_p5 }
 0x214   : > { %950 = dma.done.wait (%p684_p7), %s509_s11, 128  }
 0x215   : > { %952 = vsyncadd (%p684_p7), %s509_s11, 4294967168  ;;  %s20_s23 = sadd.s32 1, %s975_s23   ;;  %s1206_s18 = smov %s959_s19 }
 0x216   : > { %p17_p10 = scmp.ge.s32.totalorder %s20_s23, 4   ;;  %s1207_s19 = smov %s963_s20 }
 0x217   : > { %s1208_s20 = smov %s1114_s16  ;;  %s1209_s21 = smov %s971_s22 }
 0x218   : > { %s1210_s22 = smov %s1212_s9  ;;  %19 = sbr.rel (!%p17_p10) target bundleno = 9 (0x9), region = 100 }
 0x21d   :  { %515 = vsyncpa [#allocation3], 1 }
 0x21e   :  { %517 = vsyncpa [#allocation3 + $0x1], 1 }
 0x21f   :  { %518 = vsyncpa [#allocation6], 1 }
 0x220   :  { %519 = vsyncpa [#allocation4], 1 }
 0x221   :  { %521 = vsyncpa [#allocation4 + $0x1], 1 }

</bundles_post_ra>
